<compile_context>
chip_gen: v5e
topology: v5e:2x2
jax: 0.10.0
libtpu: 0.0.40
codegen_flags: <defaults>
</compile_context>

<pallas_src>
import functools

import jax
import jax.numpy as jnp
import numpy as np
from jax.experimental import pallas as pl
from jax.experimental.pallas import tpu as pltpu


def _curv_kernel(x_ref, out_ref, acc_ref, *, k_size, c_full, r_valid,
                 tile_r, tiles_per_group):
    # grid = (P, tiles_per_group): axis 0 = tile group (parallel), axis 1 = reduction.
    i = pl.program_id(1)

    @pl.when(i == 0)
    def _():
        acc_ref[...] = jnp.zeros(acc_ref.shape, acc_ref.dtype)

    x = x_ref[...].astype(jnp.float32)            # (TILE_R, W), f32 cast in-kernel
    w = x.shape[-1]
    wo = w - k_size + 1
    half = k_size // 2

    # depthwise conv with kernel2 = [+1, 0..0, -2, 0..0, +1] (cross-correlation)
    y2 = (x[:, 0:wo]
          - 2.0 * x[:, half:half + wo]
          + x[:, k_size - 1:k_size - 1 + wo])
    a = jnp.abs(y2)                               # (TILE_R, Wo)

    # Row mask: drop (a) the first 4 channels of every batch item and
    # (b) rows past the logical end of the flattened row axis (covers both any
    # wrapper zero-padding and the garbage tail of a partial trailing tile).
    tile_idx = pl.program_id(0) * tiles_per_group + i
    row0 = tile_idx * tile_r
    rows = row0 + jax.lax.broadcasted_iota(jnp.int32, (tile_r, 1), 0)
    valid = (rows < r_valid) & ((rows % c_full) >= 4)
    a = jnp.where(valid, a, 0.0)

    # Fold the tile's rows onto 8 sublanes before accumulating: same number of
    # VALU adds, but only an (8, Wo) accumulator load/add/store per step.
    folded = jnp.sum(a.reshape(tile_r // 8, 8, wo), axis=0)
    acc_ref[...] += folded

    # Single cross-lane reduce + scalar store only on the last reduction step.
    @pl.when(i == pl.num_programs(1) - 1)
    def _():
        out_ref[...] = jnp.broadcast_to(jnp.sum(acc_ref[...]), (1, 1, 1))


def pj_curvature_v2(index, target=None, k_size=35):
    """JAX/Pallas equivalent of PJcurvature_v2.forward(index, target).

    `target` only feeds L1 terms that the PyTorch module discards; it does not
    affect the returned value, so it is accepted but unused.
    """
    del target
    B, C_full, W = index.shape
    C = C_full - 4
    assert C >= 1, "index must have more than 4 channels"
    assert W >= k_size, "sequence length must be >= k_size for 'valid' conv"
    Wo = W - k_size + 1

    # Flatten (B, C_full) -> rows; metadata-only reshape, no HBM copy.
    R = B * C_full
    x2d = index.reshape(R, W)

    # Only pad (tiny copy) when the whole input has fewer than 8 rows; large
    # inputs are never copied -- partial trailing tiles are masked in-kernel.
    if R < 8:
        x2d = jnp.pad(x2d, ((0, 8 - R), (0, 0)))
    R_rows = x2d.shape[0]

    # Row-tile size: multiple of 8 sublanes, ~2 MiB per input block (enough to
    # reach >=85% of HBM roofline), capped so f32 intermediates + double
    # buffering comfortably fit v7x's smaller VMEM.
    itemsize = jnp.dtype(index.dtype).itemsize
    target_block_bytes = 2 * 1024 * 1024
    rows_desired = max(8, (target_block_bytes // max(1, W * itemsize)) // 8 * 8)
    rows_desired = min(rows_desired, 1024)
    tile_cap = max(8, (R_rows // 8) * 8)
    TILE_R = int(min(rows_desired, tile_cap))

    n_tiles = (R_rows + TILE_R - 1) // TILE_R
    # Always split the tile range in two when possible so both v7x TensorCores
    # get work (harmless on single-TC v5e/v6e). Extra/overflow tiles are
    # clamped in the index_map and fully masked in the kernel.
    P = 2 if n_tiles >= 2 else 1
    tiles_per_group = (n_tiles + P - 1) // P
    max_block = n_tiles - 1

    kernel = functools.partial(
        _curv_kernel, k_size=k_size, c_full=C_full, r_valid=R,
        tile_r=TILE_R, tiles_per_group=tiles_per_group)

    partials = pl.pallas_call(
        kernel,
        out_shape=jax.ShapeDtypeStruct((P, 1, 1), jnp.float32),
        grid=(P, tiles_per_group),
        in_specs=[
            # TILE_R rows per step, full W on lanes; clamp overflow tiles.
            pl.BlockSpec(
                (TILE_R, W),
                lambda p, i: (jnp.minimum(p * tiles_per_group + i, max_block), 0)),
        ],
        out_specs=pl.BlockSpec((1, 1, 1), lambda p, i: (p, 0, 0)),
        # TODO(synk): acc lane dim left at Wo (not padded to 128): the padded
        # unmasked-store tweak is a few-% VMEM-store nicety, skipped for safety.
        scratch_shapes=[pltpu.VMEM((8, Wo), jnp.float32)],
        compiler_params=pltpu.CompilerParams(
            dimension_semantics=("parallel", "arbitrary"),
            vmem_limit_bytes=48 * 1024 * 1024,
        ),
    )(x2d)

    total = jnp.sum(partials)                     # sum of |y2| over all (b, c, i)
    return total / jnp.float32(B * C * Wo * 5)    # mean(|y2|) / 5


def _reference(index, k_size=35):
    x = index[:, 4:, :].astype(jnp.float32)
    Wo = x.shape[-1] - k_size + 1
    half = k_size // 2
    y2 = (x[:, :, 0:Wo]
          - 2.0 * x[:, :, half:half + Wo]
          + x[:, :, k_size - 1:k_size - 1 + Wo])
    return jnp.mean(jnp.abs(y2)) / 5.0


if __name__ == "__main__":
    key = jax.random.PRNGKey(0)
    k1, k2, k3, k4 = jax.random.split(key, 4)

    # Case 1: even batch, single tile path.
    index1 = jax.random.normal(k1, (2, 8, 128), dtype=jnp.float32)
    target1 = jax.random.normal(k2, (2, 4, 128), dtype=jnp.float32)  # unused by output
    out1 = jax.block_until_ready(pj_curvature_v2(index1, target1))
    np.testing.assert_allclose(np.asarray(out1), np.asarray(_reference(index1)),
                               rtol=1e-5, atol=1e-6)

    # Case 2: odd batch / non-multiple-of-8 rows -> 2-way split + masked partial tile.
    index2 = jax.random.normal(k3, (3, 6, 96), dtype=jnp.float32)
    out2 = jax.block_until_ready(pj_curvature_v2(index2))
    np.testing.assert_allclose(np.asarray(out2), np.asarray(_reference(index2)),
                               rtol=1e-5, atol=1e-6)

    # Case 3: bf16 input kept narrow in HBM, cast to f32 only inside the kernel.
    index3 = jax.random.normal(k4, (2, 5, 64), dtype=jnp.float32).astype(jnp.bfloat16)
    out3 = jax.block_until_ready(pj_curvature_v2(index3))
    np.testing.assert_allclose(np.asarray(out3), np.asarray(_reference(index3)),
                               rtol=1e-5, atol=1e-6)

    print("KERNEL_OK")
</pallas_src>

<mosaic_0001>
module attributes {stable_mosaic.version = 11 : i64} {
  func.func @_curv_kernel(%arg0: i32, %arg1: i32, %arg2: memref<16x128xf32, #tpu.memory_space<vmem>>, %arg3: memref<1x1x1xf32, #tpu.memory_space<vmem>>, %arg4: memref<8x94xf32, #tpu.memory_space<vmem>>) attributes {dimension_semantics = [#tpu.dimension_semantics<parallel>, #tpu.dimension_semantics<arbitrary>], iteration_bounds = array<i64: 1, 1>, scalar_prefetch = 0 : i64, scratch_operands = 1 : i64, tpu.core_type = #tpu.core_type<tc>, window_params = [{transform_indices = @transform_0, window_bounds = array<i64: 16, 128>}, {transform_indices = @transform_1, window_bounds = array<i64: 1, 1, 1>}]} {
    %c0_i32 = arith.constant 0 : i32
    %0 = arith.cmpi eq, %arg1, %c0_i32 : i32
    %1 = arith.extui %0 : i1 to i32
    %c0_i32_0 = arith.constant 0 : i32
    %2 = arith.cmpi ne, %1, %c0_i32_0 : i32
    scf.if %2 {
      %cst_16 = arith.constant 0.000000e+00 : f32
      %51 = vector.broadcast %cst_16 : f32 to vector<8x94xf32>
      %c0_17 = arith.constant 0 : index
      %c0_18 = arith.constant 0 : index
      %52 = vector.load %arg4[%c0_17, %c0_18] : memref<8x94xf32, #tpu.memory_space<vmem>>, vector<8x94xf32>
      tpu.vector_store %arg4[%c0_17, %c0_18], %51 {strides = array<i32>} : memref<8x94xf32, #tpu.memory_space<vmem>>, vector<8x94xf32>,
    } else {
    }
    %c0 = arith.constant 0 : index
    %c0_1 = arith.constant 0 : index
    %3 = vector.load %arg2[%c0, %c0_1] : memref<16x128xf32, #tpu.memory_space<vmem>>, vector<16x128xf32>
    %4 = vector.extract_strided_slice %3 {offsets = [0, 0], sizes = [16, 94], strides = [1, 1]} : vector<16x128xf32> to vector<16x94xf32>
    %5 = vector.extract_strided_slice %3 {offsets = [0, 17], sizes = [16, 94], strides = [1, 1]} : vector<16x128xf32> to vector<16x94xf32>
    %cst = arith.constant 2.000000e+00 : f32
    %6 = vector.broadcast %cst : f32 to vector<16x94xf32>
    %7 = arith.mulf %6, %5 : vector<16x94xf32>
    %8 = arith.subf %4, %7 : vector<16x94xf32>
    %9 = vector.extract_strided_slice %3 {offsets = [0, 34], sizes = [16, 94], strides = [1, 1]} : vector<16x128xf32> to vector<16x94xf32>
    %10 = arith.addf %8, %9 : vector<16x94xf32>
    %11 = math.absf %10 : vector<16x94xf32>
    %c1_i32 = arith.constant 1 : i32
    %12 = arith.muli %arg0, %c1_i32 : i32
    %13 = arith.addi %12, %arg1 : i32
    %c16_i32 = arith.constant 16 : i32
    %14 = arith.muli %13, %c16_i32 : i32
    %15 = tpu.iota {dimensions = array<i32: 0>} : vector<16x1xi32>
    %16 = vector.broadcast %14 : i32 to vector<16x1xi32>
    %17 = arith.addi %16, %15 : vector<16x1xi32>
    %c16_i32_2 = arith.constant 16 : i32
    %18 = vector.broadcast %c16_i32_2 : i32 to vector<16x1xi32>
    %19 = arith.cmpi slt, %17, %18 : vector<16x1xi32>
    %c8_i32 = arith.constant 8 : i32
    %c0_i32_3 = arith.constant 0 : i32
    %20 = arith.cmpi eq, %c8_i32, %c0_i32_3 : i32
    %c1_i32_4 = arith.constant 1 : i32
    %21 = arith.select %20, %c1_i32_4, %c8_i32 : i32
    %22 = vector.broadcast %21 : i32 to vector<16x1xi32>
    %23 = arith.remsi %17, %22 : vector<16x1xi32>
    %c0_i32_5 = arith.constant 0 : i32
    %24 = vector.broadcast %c0_i32_5 : i32 to vector<16x1xi32>
    %25 = arith.cmpi ne, %23, %24 : vector<16x1xi32>
    %c0_i32_6 = arith.constant 0 : i32
    %26 = vector.broadcast %c0_i32_6 : i32 to vector<16x1xi32>
    %27 = arith.cmpi slt, %23, %26 : vector<16x1xi32>
    %c0_i32_7 = arith.constant 0 : i32
    %28 = arith.cmpi slt, %21, %c0_i32_7 : i32
    %29 = vector.broadcast %28 : i1 to vector<16x1xi1>
    %30 = vector.broadcast %29 : vector<16x1xi1> to vector<16x1xi1>
    %31 = arith.xori %27, %30 : vector<16x1xi1>
    %32 = arith.andi %31, %25 : vector<16x1xi1>
    %33 = vector.broadcast %21 : i32 to vector<16x1xi32>
    %34 = arith.addi %23, %33 : vector<16x1xi32>
    %35 = arith.select %32, %34, %23 : vector<16x1xi1>, vector<16x1xi32>
    %c4_i32 = arith.constant 4 : i32
    %36 = vector.broadcast %c4_i32 : i32 to vector<16x1xi32>
    %37 = arith.cmpi sge, %35, %36 : vector<16x1xi32>
    %38 = arith.andi %19, %37 : vector<16x1xi1>
    %cst_8 = arith.constant 0.000000e+00 : f32
    %39 = vector.shape_cast %38 : vector<16x1xi1> to vector<16x1xi1>
    %40 = vector.broadcast %39 : vector<16x1xi1> to vector<16x94xi1>
    %41 = vector.broadcast %cst_8 : f32 to vector<16x94xf32>
    %42 = arith.select %40, %11, %41 : vector<16x94xi1>, vector<16x94xf32>
    %43 = vector.shape_cast %42 : vector<16x94xf32> to vector<2x8x94xf32>
    %cst_9 = arith.constant dense<0.000000e+00> : vector<8x94xf32>
    %44 = vector.multi_reduction <add>, %43, %cst_9 [0] : vector<2x8x94xf32> to vector<8x94xf32>
    %c0_10 = arith.constant 0 : index
    %c0_11 = arith.constant 0 : index
    %45 = vector.load %arg4[%c0_10, %c0_11] : memref<8x94xf32, #tpu.memory_space<vmem>>, vector<8x94xf32>
    %46 = arith.addf %45, %44 : vector<8x94xf32>
    %c0_12 = arith.constant 0 : index
    %c0_13 = arith.constant 0 : index
    %47 = vector.load %arg4[%c0_12, %c0_13] : memref<8x94xf32, #tpu.memory_space<vmem>>, vector<8x94xf32>
    tpu.vector_store %arg4[%c0_12, %c0_13], %46 {strides = array<i32>} : memref<8x94xf32, #tpu.memory_space<vmem>>, vector<8x94xf32>,
    %c0_i32_14 = arith.constant 0 : i32
    %48 = arith.cmpi eq, %arg1, %c0_i32_14 : i32
    %49 = arith.extui %48 : i1 to i32
    %c0_i32_15 = arith.constant 0 : i32
    %50 = arith.cmpi ne, %49, %c0_i32_15 : i32
    scf.if %50 {
      %c0_16 = arith.constant 0 : index
      %c0_17 = arith.constant 0 : index
      %51 = vector.load %arg4[%c0_16, %c0_17] : memref<8x94xf32, #tpu.memory_space<vmem>>, vector<8x94xf32>
      %52 = vector.shape_cast %51 : vector<8x94xf32> to vector<1x8x94xf32>
      %cst_18 = arith.constant dense<0.000000e+00> : vector<1xf32>
      %53 = vector.multi_reduction <add>, %52, %cst_18 [1, 2] : vector<1x8x94xf32> to vector<1xf32>
      %54 = vector.shape_cast %53 : vector<1xf32> to vector<1x1x1xf32>
      %55 = vector.extract %54[0, 0, 0] : f32 from vector<1x1x1xf32>
      %56 = vector.broadcast %55 : f32 to vector<1x1x1xf32>
      %c0_19 = arith.constant 0 : index
      %c0_20 = arith.constant 0 : index
      %c0_21 = arith.constant 0 : index
      %57 = vector.load %arg3[%c0_19, %c0_20, %c0_21] : memref<1x1x1xf32, #tpu.memory_space<vmem>>, vector<1x1x1xf32>
      tpu.vector_store %arg3[%c0_19, %c0_20, %c0_21], %56 {strides = array<i32>} : memref<1x1x1xf32, #tpu.memory_space<vmem>>, vector<1x1x1xf32>,
    } else {
    }
    return
  }
  func.func @transform_0(%arg0: i32, %arg1: i32) -> (i32, i32) {
    %c1_i32 = arith.constant 1 : i32
    %0 = arith.muli %arg0, %c1_i32 : i32
    %1 = arith.addi %0, %arg1 : i32
    %c0_i32 = arith.constant 0 : i32
    %2 = arith.minsi %1, %c0_i32 : i32
    %c0_i32_0 = arith.constant 0 : i32
    %c0_i32_1 = arith.constant 0 : i32
    return %2, %c0_i32_0 : i32, i32
  }
  func.func @transform_1(%arg0: i32, %arg1: i32) -> (i32, i32, i32) {
    %c0_i32 = arith.constant 0 : i32
    %c0_i32_0 = arith.constant 0 : i32
    %c0_i32_1 = arith.constant 0 : i32
    return %arg0, %c0_i32, %c0_i32_0 : i32, i32, i32
  }
}

</mosaic_0001>

<bundles_post_ra>
// kernel: tpu_custom_call.1
= control target key start
LH: loop header
LB: loop body
LE: loop exit
PB: predicated region body
PF: predicated region fallthrough
CT: control target
= control target key end

     0   :  { %6 = vsyncpa [#allocation4], 0  ;;  %s243_s0 = inlined_call_operand.hbm [shape: f32[16,128], index: 0, kind: input, shape index: {}]   ;;  %s244_s1 = inlined_call_operand.hbm [shape: f32[1,1,1], index: 1, kind: output, shape index: {}]  }
   0x1   :  { %7 = vsyncpa [#allocation5], 0  ;;  %s18_s8 = sshll.u32 %s243_s0, 4  ;;  %s215_s9 = smov [#allocation3]   ;;  %s19_s8 = int_to_ptr.hbm [resolvable:$true] %s18_s8 }
   0x2   :  { %s20_s10 = sshll.u32 %s215_s9, 4  ;;  %s216_s11 = smov 128   ;;  %s21_s10 = int_to_ptr.vmem [resolvable:$true] %s20_s10 }
   0x3   :  { %s217_s12 = smov 8  }
   0x4   :  { %26 = dma.hbm_to_vmem [thread:$0]  %s19_s8, 256, %s21_s10, [#allocation4], %s216_s11, %s216_s11, %s217_s12  }
   0x5   :  { %211 = dma.done.wait [#allocation4], 256  }
   0x6   :  { %212 = vsyncadd [#allocation4], 4294967040  ;;  %v41_v0 = vld [vmem:[#allocation3] sm:$0xff]  ;;  %s218_s13 = smov 94   ;;  %s219_s14 = smov 111   ;;  %v42_v2 = vld [vmem:[#allocation3 + $0x8] sm:$0xff]  ;;  %v69_v5 = vlaneseq }
   0x7   :  { %v43_v1 = vmul.f32 2.0, %v41_v0  ;;  %57 = vrot.lane.b32.xlu1 %v41_v0, %s218_s13  ;;  %v44_v3 = vmul.f32 2.0, %v42_v2  ;;  %vm39_vm0 = vcmask 769024   ;;  %v220_v4 = vmov 0.0   ;;  %s221_s0 = smov [#allocation6]   ;;  %s142_s18 = sshll.u32 %s244_s1, 4  ;;  %s143_s18 = int_to_ptr.hbm [resolvable:$true] %s142_s18 }
   0x8   :  { %40 = vst.msk [vmem:[#allocation2] sm:$0xff] %vm39_vm0, %v220_v4  ;;  %v70_v9 = vshrl.u32 %v69_v5, 7  ;;  %s140_s15 = sshll.u32 %s221_s0, 4  ;;  %vm133_vm3 = vcmask 0   ;;  %s141_s15 = int_to_ptr.vmem [resolvable:$true] %s140_s15 }
   0x9   :  { %47 = vrot.lane.b32.xlu0 %v43_v1, %s219_s14 }
   0xa   :  { %v71_v10 = vadd.s32 8, %v70_v9  ;;  %v81_v12 = vand.u32 7, %v70_v9 }
   0xc   :  { %v88_v14 = vand.u32 7, %v71_v10  ;;  %vm101_vm1 = vcmp.ge.s32.totalorder %v81_v12, 4 }
   0xe   :  { %vm102_vm2 = vcmp.ge.s32.totalorder %v88_v14, 4 }
   0xf   :  { %59 = vrot.lane.b32.xlu1 %v42_v2, %s218_s13  ;;  %v115_v24 = vld [vmem:[#allocation2] sm:$0xff] }
  0x11   :  { %49 = vrot.lane.b32.xlu0 %v44_v3, %s219_s14 }
  0x79   :  { %v58_v6 = vpop.permute.xlu1 %57 }
  0x7b   :  { %v48_v7 = vpop.permute.xlu0 %47 }
  0x7c   :  { %v53_v8 = vsub.f32 %v41_v0, %v48_v7 }
  0x7e   :  { %v63_v11 = vadd.f32 %v58_v6, %v53_v8 }
  0x80   :  { %v65_v16 = vand.u32 2147483647, %v63_v11 }
  0x81   :  { %v60_v15 = vpop.permute.xlu1 %59 }
  0x82   :  { %v109_v19 = vsel %vm101_vm1, %v65_v16, 0.0 }
  0x83   :  { %v50_v13 = vpop.permute.xlu0 %49  ;;  %v112_v22 = vsel %vm39_vm0, %v109_v19, 0.0 }
  0x84   :  { %v54_v17 = vsub.f32 %v42_v2, %v50_v13 }
  0x86   :  { %v64_v18 = vadd.f32 %v60_v15, %v54_v17 }
  0x88   :  { %v66_v20 = vand.u32 2147483647, %v64_v18 }
  0x8a   :  { %v110_v21 = vsel %vm102_vm2, %v66_v20, 0.0 }
  0x8b   :  { %v113_v23 = vsel %vm39_vm0, %v110_v21, 0.0 }
  0x8c   :  { %v114_v25 = vadd.f32 %v113_v23, %v112_v22 }
  0x8e   :  { %v116_v26 = vadd.f32 %v115_v24, %v114_v25 }
  0x90   :  { %117 = vst.msk [vmem:[#allocation2] sm:$0xff] %vm39_vm0, %v116_v26 }
  0x97   :  { %v121_v27 = vld [vmem:[#allocation2] sm:$0xff] }
  0x98   :  { %v122_v28 = vsel %vm39_vm0, %v121_v27, 0.0 }
  0x99   :  { %123 = vadd.xlane.f32.xlu2 %v122_v28 }
 0x10c   :  { %v124_v29 = vpop.xlane.xlu2 %123 }
 0x10d   :  { %v125_v30 = vrot.slane %v124_v29, 4 }
 0x10f   :  { %v126_v31 = vadd.f32 %v125_v30, %v124_v29 }
 0x111   :  { %v127_v32 = vrot.slane %v126_v31, 2 }
 0x113   :  { %v128_v33 = vadd.f32 %v127_v32, %v126_v31 }
 0x115   :  { %v129_v34 = vrot.slane %v128_v33, 1 }
 0x117   :  { %v130_v35 = vadd.f32 %v129_v34, %v128_v33 }
 0x119   :  { %154 = vpush %v130_v35 }
 0x14a   :  { %s155_s19 = spop %154 }
 0x14b   :  { %v132_v36 = vstv %s155_s19 }
 0x14c   :  { %134 = vst.msk [vmem:[#allocation6] sm:$0x1] %vm133_vm3, %v132_v36 }
 0x14d   :  { %145 = dma.vmem_to_hbm [thread:$0]  %s141_s15, 16, %s143_s18, [#allocation5]  }
 0x14e   :  { %213 = dma.done.wait [#allocation5], 16  }
 0x14f   :  { %214 = vsyncadd [#allocation5], 4294967280 }
 0x150   :  { %150 = vsyncpa [#allocation4], 1 }
 0x151   :  { %151 = vsyncpa [#allocation5], 1 }

</bundles_post_ra>
